<compile_context>
chip_gen: v7x
topology: tpu7x:2x2x1
jax: 0.10.0
libtpu: 0.0.40
codegen_flags: <defaults>
</compile_context>

<pallas_src>
import math

import jax
import jax.numpy as jnp
from jax.experimental import pallas as pl
from jax.experimental.pallas import tpu as pltpu


def make_pe_table(d_model: int, max_len: int = 5000) -> jnp.ndarray:
    """Deterministic sinusoidal table, matches the torch buffer pe[:, 0, :] -> (max_len, d_model)."""
    position = jnp.arange(max_len, dtype=jnp.float32)[:, None]                  # (max_len, 1)
    div_term = jnp.exp(jnp.arange(0, d_model, 2, dtype=jnp.float32)
                       * (-math.log(10000.0) / d_model))                        # (d_model/2,)
    pe = jnp.zeros((max_len, d_model), dtype=jnp.float32)
    pe = pe.at[:, 0::2].set(jnp.sin(position * div_term))
    pe = pe.at[:, 1::2].set(jnp.cos(position * div_term))
    return pe


# ----------------------------- kernels --------------------------------------

def _pe_add_kernel(x_ref, pe_ref, o_ref):
    # x_ref/pe_ref/o_ref: (row_tile, width) -- plain full-width elementwise add.
    o_ref[...] = (x_ref[...] + pe_ref[...]).astype(o_ref.dtype)


def _pe_add_dropout_kernel(x_ref, pe_ref, mask_ref, o_ref):
    # mask_ref holds {0, 1/(1-p)} in the same dtype -> inverted dropout fused with the add.
    o_ref[...] = ((x_ref[...] + pe_ref[...]) * mask_ref[...]).astype(o_ref.dtype)


# ----------------------------- wrapper ---------------------------------------

def _choose_row_tile(total_rows: int, period: int, width: int, itemsize: int,
                     target_bytes: int = 2 << 20) -> int:
    """Largest row tile that (a) divides total_rows, (b) is a multiple of lcm(period, 8)
    so sublane layout is dense and the pe block stays aligned, and (c) keeps one block
    near ~2 MiB (safe for 16 MiB v5e scoped VMEM with double buffering).  Falls back to a
    single full-array block for tiny / awkward shapes."""
    base = (period * 8) // math.gcd(period, 8)          # lcm(period, 8)
    if total_rows % base != 0:
        return total_rows                               # single full block (always legal)
    max_rows = max(base, (target_bytes // (width * itemsize)) // base * base)
    t = min(max_rows, total_rows)
    t -= t % base
    while t >= base and total_rows % t != 0:
        t -= base
    return t if t >= base else total_rows


def positional_encoding_forward(x: jnp.ndarray,
                                pe: jnp.ndarray,
                                *,
                                p: float = 0.1,
                                training: bool = False,
                                rng_key=None) -> jnp.ndarray:
    """x: [S, B, D] (same axis convention as the torch module's forward input)."""
    S, B, D = x.shape
    dtype = x.dtype
    itemsize = jnp.dtype(dtype).itemsize
    N = S * B * D

    # Faithful to the torch code: pe is indexed by the *batch* size (dim 0 after transpose).
    pe_slice = pe[:B].astype(dtype)                                  # (B, D)

    # --- pick a lane-dense 2D view of x -------------------------------------
    if D % 128 == 0:
        # (S*B, D): D already lane-dense; pe repeats every B rows.
        rows, width, period = S * B, D, B
        x2 = x.reshape(rows, width)
        pe_period = pe_slice                                         # (B, D)
    elif N % 128 == 0 and (((B * D * 128) // math.gcd(B * D, 128)) * itemsize) <= (1 << 20):
        # Fully flat (N//128, 128) view: pe repeats every lcm(B*D, 128)//128 rows.
        rows, width = N // 128, 128
        period = ((B * D) * 128 // math.gcd(B * D, 128)) // 128
        x2 = x.reshape(rows, width)
        pe_period = jnp.tile(pe_slice.reshape(-1),
                             (period * 128) // (B * D)).reshape(period, 128)
    else:
        # TODO(synk): last dim < 128 and not foldable -> masked partial stores; acceptable
        # fallback, still correct.
        rows, width, period = S * B, D, B
        x2 = x.reshape(rows, width)
        pe_period = pe_slice

    row_tile = _choose_row_tile(rows, period, width, itemsize)
    grid = (rows // row_tile,)

    # One VMEM-resident pe block (constant index_map below -> fetched once).
    pe_tiled = jnp.tile(pe_period, (row_tile // period, 1))          # (row_tile, width)

    data_spec = pl.BlockSpec((row_tile, width), lambda i: (i, 0))
    pe_spec = pl.BlockSpec((row_tile, width), lambda i: (0, 0))

    if training and p > 0.0:
        if rng_key is None:
            rng_key = jax.random.PRNGKey(0)
        keep = jax.random.bernoulli(rng_key, 1.0 - p, (rows, width))
        scale = jnp.asarray(1.0 / (1.0 - p), dtype)                  # stay in input dtype
        mask = jnp.where(keep, scale, jnp.zeros((), dtype)).astype(dtype)
        kernel = _pe_add_dropout_kernel
        in_specs = [data_spec, pe_spec, data_spec]
        args = (x2, pe_tiled, mask)
    else:
        kernel = _pe_add_kernel
        in_specs = [data_spec, pe_spec]
        args = (x2, pe_tiled)

    out2 = pl.pallas_call(
        kernel,
        out_shape=jax.ShapeDtypeStruct((rows, width), dtype),
        grid=grid,
        in_specs=in_specs,
        out_specs=data_spec,
        compiler_params=pltpu.CompilerParams(
            dimension_semantics=("parallel",),      # shard row tiles across TCs (v7x)
        ),
    )(*args)

    return out2.reshape(S, B, D)


if __name__ == "__main__":
    # Small shapes consistent with the module: [seq_len, batch, d_model]
    S, B, D = 8, 2, 32
    key = jax.random.PRNGKey(0)
    x = jax.random.normal(key, (S, B, D), dtype=jnp.float32)

    pe = make_pe_table(d_model=D, max_len=5000)        # deterministic buffer, as in __init__

    # Eval-mode forward (dropout = identity) so the result is deterministic and checkable.
    out = jax.block_until_ready(positional_encoding_forward(x, pe, p=0.1, training=False))

    # Pure-JAX reference of the exact torch math:  out[s,b,d] = x[s,b,d] + pe[b,d]
    ref = x + pe[:B][None, :, :]
    assert out.shape == (S, B, D)
    assert jnp.allclose(out, ref, atol=1e-6, rtol=1e-6)

    # Training path (stochastic mask streamed into the kernel): check it runs + shape.
    out_train = jax.block_until_ready(
        positional_encoding_forward(x, pe, p=0.1, training=True,
                                    rng_key=jax.random.PRNGKey(123)))
    assert out_train.shape == (S, B, D)

    print("KERNEL_OK")
</pallas_src>

<mosaic_0001>
module attributes {stable_mosaic.version = 11 : i64} {
  func.func @_pe_add_kernel(%arg0: i32, %arg1: memref<4x128xf32, #tpu.memory_space<vmem>>, %arg2: memref<4x128xf32, #tpu.memory_space<vmem>>, %arg3: memref<4x128xf32, #tpu.memory_space<vmem>>) attributes {dimension_semantics = [#tpu.dimension_semantics<parallel>], iteration_bounds = array<i64: 1>, scalar_prefetch = 0 : i64, scratch_operands = 0 : i64, tpu.core_type = #tpu.core_type<tc>, window_params = [{transform_indices = @transform_0, window_bounds = array<i64: 4, 128>}, {pipeline_mode = #tpu.pipeline_mode<synchronous>, transform_indices = @transform_1, window_bounds = array<i64: 4, 128>}, {transform_indices = @transform_2, window_bounds = array<i64: 4, 128>}]} {
    %c0 = arith.constant 0 : index
    %c0_0 = arith.constant 0 : index
    %0 = vector.load %arg1[%c0, %c0_0] : memref<4x128xf32, #tpu.memory_space<vmem>>, vector<4x128xf32>
    %c0_1 = arith.constant 0 : index
    %c0_2 = arith.constant 0 : index
    %1 = vector.load %arg2[%c0_1, %c0_2] : memref<4x128xf32, #tpu.memory_space<vmem>>, vector<4x128xf32>
    %2 = arith.addf %0, %1 : vector<4x128xf32>
    %c0_3 = arith.constant 0 : index
    %c0_4 = arith.constant 0 : index
    %3 = vector.load %arg3[%c0_3, %c0_4] : memref<4x128xf32, #tpu.memory_space<vmem>>, vector<4x128xf32>
    tpu.vector_store %arg3[%c0_3, %c0_4], %2 {strides = array<i32>} : memref<4x128xf32, #tpu.memory_space<vmem>>, vector<4x128xf32>,
    return
  }
  func.func @transform_0(%arg0: i32) -> (i32, i32) {
    %c0_i32 = arith.constant 0 : i32
    %c0_i32_0 = arith.constant 0 : i32
    return %arg0, %c0_i32 : i32, i32
  }
  func.func @transform_1(%arg0: i32) -> (i32, i32) {
    %c0_i32 = arith.constant 0 : i32
    %c0_i32_0 = arith.constant 0 : i32
    %c0_i32_1 = arith.constant 0 : i32
    return %c0_i32, %c0_i32_0 : i32, i32
  }
  func.func @transform_2(%arg0: i32) -> (i32, i32) {
    %c0_i32 = arith.constant 0 : i32
    %c0_i32_0 = arith.constant 0 : i32
    return %arg0, %c0_i32 : i32, i32
  }
}

</mosaic_0001>

<bundles_post_ra>
// kernel: tpu_custom_call.1
= control target key start
LH: loop header
LB: loop body
LE: loop exit
PB: predicated region body
PF: predicated region fallthrough
CT: control target
= control target key end

     0   :  { %7 = vsyncpa [#allocation3], 0  ;;  %s185_s0 = inlined_call_operand.hbm [shape: f32[4,128], index: 0, kind: input, shape index: {}]   ;;  %s186_s1 = inlined_call_operand.hbm [shape: f32[4,128], index: 1, kind: input, shape index: {}]   ;;  %s187_s2 = inlined_call_operand.hbm [shape: f32[4,128], index: 2, kind: output, shape index: {}]  }
   0x1   :  { %8 = vsyncpa [#allocation6], 0 }
   0x2   :  { %9 = vsyncpa [#allocation4], 0  ;;  %s131_s9 = smov [#allocation2]   ;;  %s132_s11 = smov [#allocation5]  }
   0x3   :  { %s16_s10 = sshll.u32 %s131_s9, 4  ;;  %s26_s12 = sshll.u32 %s132_s11, 4  ;;  %s17_s10 = int_to_ptr.vmem [resolvable:$true] %s16_s10  ;;  %s27_s12 = int_to_ptr.vmem [resolvable:$true] %s26_s12 }
   0x4   :  { %s59_s15 = scalar_lea.hbm %s185_s0, 64 }
   0x5   :  { %p60_p0 = scmp.ne.s32.totalorder %s185_s0, %s59_s15  ;;  %p63_p1 = scmp.lt.u32.totalorder %s59_s15, %s185_s0 }
   0x7   :  { %p65_p2 = pnand %p63_p1, %p60_p0 }
   0x9   :  { %68 = shalt.err (!%p65_p2)
}
   0xa   :  { %s69_s20 = scalar_lea.vmem %s17_s10, 64  ;;  %p74_p4 = scmp.lt.s32.totalorder %s17_s10, %s17_s10 }
   0xb   :  { %p70_p3 = scmp.ne.s32.totalorder %s17_s10, %s69_s20  ;;  %p75_p5 = scmp.lt.s32.totalorder %s69_s20, %s69_s20 }
   0xd   :  { %p76_p6 = por %p75_p5, %p74_p4 }
   0xf   :  { %p77_p7 = pnand %p76_p6, %p70_p3 }
  0x11   :  { %80 = shalt.err (!%p77_p7)
}
  0x12   :  { %19 = dma.hbm_to_vmem [thread:$0]  %s185_s0, 64, %s17_s10, [#allocation3]  }
  0x13   :  { %s81_s25 = scalar_lea.hbm %s186_s1, 64 }
  0x14   :  { %p82_p8 = scmp.ne.s32.totalorder %s186_s1, %s81_s25  ;;  %p85_p9 = scmp.lt.u32.totalorder %s81_s25, %s186_s1 }
  0x16   :  { %p87_p10 = pnand %p85_p9, %p82_p8 }
  0x18   :  { %90 = shalt.err (!%p87_p10)
}
  0x19   :  { %s91_s30 = scalar_lea.vmem %s27_s12, 64  ;;  %p96_p12 = scmp.lt.s32.totalorder %s27_s12, %s27_s12 }
  0x1a   :  { %p92_p11 = scmp.ne.s32.totalorder %s27_s12, %s91_s30  ;;  %p97_p13 = scmp.lt.s32.totalorder %s91_s30, %s91_s30 }
  0x1c   :  { %p98_p0 = por %p97_p13, %p96_p12 }
  0x1e   :  { %p99_p1 = pnand %p98_p0, %p92_p11 }
  0x20   :  { %102 = shalt.err (!%p99_p1)
}
  0x21   :  { %29 = dma.hbm_to_vmem [thread:$0]  %s186_s1, 64, %s27_s12, [#allocation6]  }
  0x22   :  { %125 = dma.done.wait [#allocation3], 64  }
  0x23   :  { %126 = vsyncadd [#allocation3], 4294967232 }
  0x24   :  { %127 = dma.done.wait [#allocation6], 64  }
  0x25   :  { %128 = vsyncadd [#allocation6], 4294967232  ;;  %s133_s4 = smov [#allocation7]   ;;  %v36_v0 = vld [vmem:[#allocation2] sm:$0xf] }
  0x26   :  { %s46_s5 = sshll.u32 %s133_s4, 4  ;;  %v37_v1 = vld [vmem:[#allocation5] sm:$0xf]  ;;  %s47_s5 = int_to_ptr.vmem [resolvable:$true] %s46_s5 }
  0x27   :  { %v38_v2 = vadd.f32 %v37_v1, %v36_v0  ;;  %s103_s6 = scalar_lea.vmem %s47_s5, 64  ;;  %p108_p3 = scmp.lt.s32.totalorder %s47_s5, %s47_s5 }
  0x28   :  { %p104_p2 = scmp.ne.s32.totalorder %s47_s5, %s103_s6  ;;  %p109_p4 = scmp.lt.s32.totalorder %s103_s6, %s103_s6 }
  0x29   :  { %39 = vst [vmem:[#allocation7] sm:$0xf] %v38_v2 }
  0x2a   :  { %p110_p5 = por %p109_p4, %p108_p3 }
  0x2c   :  { %p111_p6 = pnand %p110_p5, %p104_p2 }
  0x2e   :  { %114 = shalt.err (!%p111_p6)
}
  0x2f   :  { %s115_s8 = scalar_lea.hbm %s187_s2, 64 }
  0x30   :  { %p116_p7 = scmp.ne.s32.totalorder %s187_s2, %s115_s8  ;;  %p119_p8 = scmp.lt.u32.totalorder %s115_s8, %s187_s2 }
  0x32   :  { %p121_p9 = pnand %p119_p8, %p116_p7 }
  0x34   :  { %124 = shalt.err (!%p121_p9)
}
  0x35   :  { %49 = dma.vmem_to_hbm [thread:$0]  %s47_s5, 64, %s187_s2, [#allocation4]  }
  0x36   :  { %129 = dma.done.wait [#allocation4], 64  }
  0x37   :  { %130 = vsyncadd [#allocation4], 4294967232 }
  0x38   :  { %53 = vsyncpa [#allocation3], 1 }
  0x39   :  { %54 = vsyncpa [#allocation6], 1 }
  0x3a   :  { %55 = vsyncpa [#allocation4], 1 }

</bundles_post_ra>
